<compile_context>
chip_gen: v5e
topology: v5e:2x2
jax: 0.10.0
libtpu: 0.0.40
codegen_flags: <defaults>
</compile_context>

<pallas_src>
import functools

import jax
import jax.numpy as jnp
from jax.experimental import pallas as pl
from jax.experimental.pallas import tpu as pltpu

IN_FEATURES = 32
OUT_FEATURES = 68
LANE = 128  # TPU lane width; pad out_features to this for unmasked stores.


def _last_row_linear_kernel(x_ref, wb_ref, o_ref, *, in_features: int):
    """o = x[-1:] @ W + b, with W = wb[:in] and b packed as wb[in:] (one operand)."""
    batch = x_ref.shape[0]
    x_last = x_ref[pl.ds(batch - 1, 1), :]        # (1, in)         -- fused y[-1]
    w = wb_ref[pl.ds(0, in_features), :]          # (in, out_pad)
    b = wb_ref[pl.ds(in_features, 1), :]          # (1,  out_pad)   -- folded bias row
    o_ref[...] = jnp.dot(x_last, w, preferred_element_type=jnp.float32) + b


def prepare_params(w, b, lane_pad: int = LANE):
    """Fold bias into the weight and zero-pad the output dim to a lane multiple.

    Done once, outside the hot path.  Returns wb of shape (in_features+1, out_pad).
    """
    in_f, out_f = w.shape
    b = jnp.reshape(b, (1, out_f)).astype(w.dtype)
    wb = jnp.concatenate([w, b], axis=0)          # (in+1, out)
    out_pad = ((out_f + lane_pad - 1) // lane_pad) * lane_pad
    if out_pad != out_f:
        wb = jnp.pad(wb, ((0, 0), (0, out_pad - out_f)))
    return wb


@functools.partial(jax.jit, static_argnames=("out_features",))
def model_wrapper_forward(x, wb, out_features: int = OUT_FEATURES):
    """Equivalent of ModelWrapper.forward for module = Linear(32 -> 68)."""
    batch, in_f = x.shape
    out_pad = wb.shape[1]
    kernel = functools.partial(_last_row_linear_kernel, in_features=in_f)
    y = pl.pallas_call(
        kernel,
        out_shape=jax.ShapeDtypeStruct((1, out_pad), jnp.float32),
        in_specs=[
            pl.BlockSpec(memory_space=pltpu.MemorySpace.VMEM),  # x  (whole array)
            pl.BlockSpec(memory_space=pltpu.MemorySpace.VMEM),  # wb (whole array)
        ],
        out_specs=pl.BlockSpec(memory_space=pltpu.MemorySpace.VMEM),
        cost_estimate=pl.CostEstimate(
            flops=2 * in_f * out_pad,
            transcendentals=0,
            bytes_accessed=(x.size + wb.size + out_pad) * 4,
        ),
    )(x, wb)
    # torch: y = y[-1]; y = torch.reshape(y, (1, 68)).  The [-1] selection
    # already happened in-kernel; just drop the zero-padded lanes.
    return y[:, :out_features]


if __name__ == "__main__":
    # TODO(synk): the wrapped `module` is not defined in the source file; a
    # deterministic Linear(32 -> 68) stand-in is used so y[-1] has 68 elements.
    key = jax.random.PRNGKey(0)
    kx, kw, kb = jax.random.split(key, 3)

    batch, in_features, out_features = 2, IN_FEATURES, OUT_FEATURES
    x = jax.random.normal(kx, (batch, in_features), dtype=jnp.float32)
    w = 0.1 * jax.random.normal(kw, (in_features, out_features), dtype=jnp.float32)
    b = 0.1 * jax.random.normal(kb, (out_features,), dtype=jnp.float32)  # torch layout

    # One-time parameter prep: fold bias into the weight, pad lanes 68 -> 128.
    wb = prepare_params(w, b)  # (33, 128)

    out = model_wrapper_forward(x, wb, out_features=out_features)
    out = jax.block_until_ready(out)

    # Correctness check against plain-JAX reference of the same forward pass.
    ref = jnp.reshape((x @ w + b[None, :])[-1], (1, 68))
    assert out.shape == (1, 68), out.shape
    assert jnp.allclose(out, ref, atol=1e-5, rtol=1e-5)

    print("KERNEL_OK")
</pallas_src>

<mosaic_0001>
module attributes {stable_mosaic.version = 11 : i64} {
  func.func @_last_row_linear_kernel(%arg0: memref<2x32xf32, #tpu.memory_space<vmem>>, %arg1: memref<33x128xf32, #tpu.memory_space<vmem>>, %arg2: memref<1x128xf32, #tpu.memory_space<vmem>>) attributes {dimension_semantics = [], scalar_prefetch = 0 : i64, scratch_operands = 0 : i64, tpu.core_type = #tpu.core_type<tc>} {
    %c1 = arith.constant 1 : index
    %c0 = arith.constant 0 : index
    %0 = vector.load %arg0[%c1, %c0] : memref<2x32xf32, #tpu.memory_space<vmem>>, vector<1x32xf32>
    %c0_0 = arith.constant 0 : index
    %c0_1 = arith.constant 0 : index
    %1 = vector.load %arg1[%c0_0, %c0_1] : memref<33x128xf32, #tpu.memory_space<vmem>>, vector<32x128xf32>
    %c32 = arith.constant 32 : index
    %c0_2 = arith.constant 0 : index
    %2 = vector.load %arg1[%c32, %c0_2] : memref<33x128xf32, #tpu.memory_space<vmem>>, vector<1x128xf32>
    %cst = arith.constant dense<0.000000e+00> : vector<1x128xf32>
    %3 = tpu.matmul %0, %1, %cst {dimension_numbers = #tpu.dot_dimension_numbers<[1], [0], [0], [1], [0, 0, 1, 1], [], []>} : vector<1x32xf32>, vector<32x128xf32>, vector<1x128xf32> -> vector<1x128xf32>
    %4 = arith.addf %3, %2 : vector<1x128xf32>
    %c0_3 = arith.constant 0 : index
    %c0_4 = arith.constant 0 : index
    %5 = vector.load %arg2[%c0_3, %c0_4] : memref<1x128xf32, #tpu.memory_space<vmem>>, vector<1x128xf32>
    tpu.vector_store %arg2[%c0_3, %c0_4], %4 {strides = array<i32>} : memref<1x128xf32, #tpu.memory_space<vmem>>, vector<1x128xf32>,
    return
  }
}

</mosaic_0001>

<bundles_post_ra>
// kernel: model_wrapper_forward.1
= control target key start
LH: loop header
LB: loop body
LE: loop exit
PB: predicated region body
PF: predicated region fallthrough
CT: control target
= control target key end

     0   :  { %7 = vsyncpa [#allocation3], 0  ;;  %s204_s0 = inlined_call_operand.hbm [shape: f32[2,32], index: 0, kind: input, shape index: {}]   ;;  %s205_s1 = inlined_call_operand.hbm [shape: f32[33,128], index: 1, kind: input, shape index: {}]   ;;  %s206_s2 = inlined_call_operand.hbm [shape: f32[1,128], index: 2, kind: output, shape index: {}]  }
   0x1   :  { %8 = vsyncpa [#allocation6], 0 }
   0x2   :  { %9 = vsyncpa [#allocation4], 0  ;;  %s15_s11 = sshll.u32 %s204_s0, 4  ;;  %s175_s12 = smov [#allocation2]   ;;  %s16_s11 = int_to_ptr.hbm [resolvable:$true] %s15_s11 }
   0x3   :  { %s17_s13 = sshll.u32 %s175_s12, 4  ;;  %s25_s16 = sshll.u32 %s205_s1, 4  ;;  %s18_s13 = int_to_ptr.vmem [resolvable:$true] %s17_s13  ;;  %s26_s16 = int_to_ptr.hbm [resolvable:$true] %s25_s16 }
   0x4   :  { %20 = dma.hbm_to_vmem [thread:$0]  %s16_s11, 32, %s18_s13, [#allocation3]  }
   0x5   :  { %s176_s17 = smov [#allocation5]   ;;  %s177_s19 = smov 128  }
   0x6   :  { %s27_s18 = sshll.u32 %s176_s17, 4  ;;  %s178_s20 = smov 8   ;;  %s28_s18 = int_to_ptr.vmem [resolvable:$true] %s27_s18 }
   0x7   :  { %33 = dma.hbm_to_vmem [thread:$0]  %s26_s16, 640, %s28_s18, [#allocation6], %s177_s19, %s177_s19, %s178_s20  }
   0x8   :  { %169 = dma.done.wait [#allocation3], 32  }
   0x9   :  { %170 = vsyncadd [#allocation3], 4294967264 }
   0xa   :  { %171 = dma.done.wait [#allocation6], 640  }
   0xb   :  { %172 = vsyncadd [#allocation6], 4294966656  ;;  %v46_v0 = vld [vmem:[#allocation5 + $0x18] sm:$0xff]  ;;  %v45_v1 = vld [vmem:[#allocation5 + $0x10] sm:$0xff]  ;;  %vm48_vm0 = vcmask 261120   ;;  %s179_s0 = smov [#allocation7]  }
   0xc   :  { %64 = vmatpush.msra.mxu0 %v46_v0  ;;  %v44_v2 = vld [vmem:[#allocation5 + $0x8] sm:$0xff]  ;;  %v43_v3 = vld [vmem:[#allocation5] sm:$0xff]  ;;  %v42_v4 = vld [vmem:[#allocation2 + $0x1] sm:$0x1]  ;;  %s78_s1 = sshll.u32 %s179_s0, 4  ;;  %s80_s23 = sshll.u32 %s206_s2, 4  ;;  %s79_s1 = int_to_ptr.vmem [resolvable:$true] %s78_s1  ;;  %s81_s23 = int_to_ptr.hbm [resolvable:$true] %s80_s23 }
   0xd   :  { %v47_v5 = vld [vmem:[#allocation5 + $0x20] sm:$0x1] }
   0xe   :  { %65 = vmatpush.msra.mxu0 %v45_v1 }
  0x10   :  { %66 = vmatpush.msra.mxu0 %v44_v2 }
  0x12   :  { %67 = vmatpush.msra.mxu0 %v43_v3 }
  0x13   :  { %91 = vmatmul.msk.f32.vlgmr.msra.gmra.mxu0 %vm48_vm0, %v42_v4 }
  0x90   :  { %v69_v6 = vpop.f32.mrf.mxu0 }
  0x91   :  { %v70_v7 = vadd.f32 %v69_v6, %v47_v5 }
  0x93   :  { %72 = vst [vmem:[#allocation7] sm:$0x1] %v70_v7 }
  0x94   :  { %83 = dma.vmem_to_hbm [thread:$0]  %s79_s1, 16, %s81_s23, [#allocation4]  }
  0x95   :  { %173 = dma.done.wait [#allocation4], 16  }
  0x96   :  { %174 = vsyncadd [#allocation4], 4294967280 }
  0x97   :  { %88 = vsyncpa [#allocation3], 1 }
  0x98   :  { %89 = vsyncpa [#allocation6], 1 }
  0x99   :  { %90 = vsyncpa [#allocation4], 1 }

</bundles_post_ra>
